<compile_context>
chip_gen: v5e
topology: v5e:2x2
jax: 0.10.0
libtpu: 0.0.40
codegen_flags: <defaults>
</compile_context>

<pallas_src>
import math
from functools import partial

import jax
import jax.numpy as jnp
from jax.experimental import pallas as pl
from jax.experimental.pallas import tpu as pltpu


def _attn_dropout_kernel(q_ref, k_ref, v_ref, r_ref, o_ref,
                         *, scale_mult, thresh, inv_keep):
    """One invocation computes the full batched attention.

    q_ref: (B, M, D)   k_ref: (B, N, D)   v_ref: (B, N, Dv)
    r_ref: (B, M, N) int32 uniform in [0, 2^24)   o_ref: (B, M, Dv)
    Static (compile-time) params:
      scale_mult = 1 / inv_scale_factor
      thresh     = round(dropout_p * 2^24)   (drop iff r < thresh)
      inv_keep   = 1 / (1 - dropout_p)       (0.0 if dropout_p >= 1)
    """
    q = q_ref[...]
    k = k_ref[...]
    v = v_ref[...]
    r = r_ref[...]

    # scores = (q @ k^T) * (1 / inv_scale_factor)   -- batched MXU matmul.
    s = jnp.einsum("bmd,bnd->bmn", q, k, preferred_element_type=jnp.float32)
    s = s * jnp.float32(scale_mult)

    # Numerically stable softmax numerator / denominator.
    m = jnp.max(s, axis=-1, keepdims=True)
    e = jnp.exp(s - m)                                   # (B, M, N)
    denom = jnp.sum(e, axis=-1, keepdims=True)           # (B, M, 1)

    # Fuse softmax normalization and inverted-dropout 1/(1-p) into one small
    # (B, M, 1) reciprocal; dropout decision is a single int32 compare.
    inv = jnp.float32(inv_keep) / denom                  # (B, M, 1)
    keep = r >= jnp.int32(thresh)                        # (B, M, N) bool
    p_drop = jnp.where(keep, e, jnp.float32(0.0)) * inv  # (B, M, N)

    # out = dropout(softmax(scores)) @ value   -- batched MXU matmul.
    o_ref[...] = jnp.einsum("bmn,bnv->bmv", p_drop, v,
                            preferred_element_type=jnp.float32
                            ).astype(o_ref.dtype)


def attention_dropout(query, key, value, inv_scale_factor, dropout_p, seed=42):
    B, M, D = query.shape
    _, N, _ = key.shape
    _, _, Dv = value.shape

    # Host-side scalar precomputation (folded into the kernel as constants).
    scale_mult = 1.0 / float(inv_scale_factor)
    p = float(dropout_p)
    keep_prob = 1.0 - p
    if keep_prob <= 0.0:          # p >= 1: everything dropped, output is zero.
        thresh = 1 << 24
        inv_keep = 0.0
    else:
        thresh = int(round(p * (1 << 24)))
        inv_keep = 1.0 / keep_prob

    # One batched dropout-randomness draw (uniform int32 in [0, 2^24)).
    # TODO(synk): not bit-identical to torch's Philox-based dropout stream.
    rand = jax.random.randint(jax.random.PRNGKey(seed), (B, M, N),
                              0, 1 << 24, dtype=jnp.int32)

    kernel = partial(_attn_dropout_kernel,
                     scale_mult=scale_mult, thresh=thresh, inv_keep=inv_keep)

    return pl.pallas_call(
        kernel,
        out_shape=jax.ShapeDtypeStruct((B, M, Dv), jnp.float32),
        grid=(1,),  # single step: everything fits in VMEM on v5e/v6e/v7x
        in_specs=[
            pl.BlockSpec((B, M, D), lambda i: (0, 0, 0)),
            pl.BlockSpec((B, N, D), lambda i: (0, 0, 0)),
            pl.BlockSpec((B, N, Dv), lambda i: (0, 0, 0)),
            pl.BlockSpec((B, M, N), lambda i: (0, 0, 0)),
        ],
        out_specs=pl.BlockSpec((B, M, Dv), lambda i: (0, 0, 0)),
        compiler_params=pltpu.CompilerParams(
            dimension_semantics=("arbitrary",)),
    )(query, key, value, rand)


if __name__ == "__main__":
    # Shapes match the PyTorch script: query (4,8,16), key (4,16,16), value (4,16,64)
    k0 = jax.random.PRNGKey(0)
    kq, kk, kv = jax.random.split(k0, 3)
    query = jax.random.normal(kq, (4, 8, 16), dtype=jnp.float32)
    key = jax.random.normal(kk, (4, 16, 16), dtype=jnp.float32)
    value = jax.random.normal(kv, (4, 16, 64), dtype=jnp.float32)

    inv_scale_factor = math.sqrt(16.0)  # divide scores by sqrt(d_k)
    dropout_p = 0.5

    out = attention_dropout(query, key, value, inv_scale_factor, dropout_p)
    jax.block_until_ready(out)
    assert out.shape == (4, 8, 64), out.shape
    assert bool(jnp.all(jnp.isfinite(out)))

    # Sanity check: with dropout disabled (p=0) the kernel must match a
    # pure-JAX reference of the same forward pass.
    ref_qk = jnp.einsum("bmd,bnd->bmn", query, key) / inv_scale_factor
    ref = jnp.einsum("bmn,bnv->bmv", jax.nn.softmax(ref_qk, axis=-1), value)
    out_nodrop = attention_dropout(query, key, value, inv_scale_factor, 0.0)
    jax.block_until_ready(out_nodrop)
    assert jnp.allclose(out_nodrop, ref, atol=1e-4, rtol=1e-4)

    print("KERNEL_OK")
</pallas_src>

<mosaic_0001>
module attributes {stable_mosaic.version = 11 : i64} {
  func.func @_attn_dropout_kernel(%arg0: i32, %arg1: memref<4x8x16xf32, #tpu.memory_space<vmem>>, %arg2: memref<4x16x16xf32, #tpu.memory_space<vmem>>, %arg3: memref<4x16x64xf32, #tpu.memory_space<vmem>>, %arg4: memref<4x8x16xi32, #tpu.memory_space<vmem>>, %arg5: memref<4x8x64xf32, #tpu.memory_space<vmem>>) attributes {dimension_semantics = [#tpu.dimension_semantics<arbitrary>], iteration_bounds = array<i64: 1>, scalar_prefetch = 0 : i64, scratch_operands = 0 : i64, tpu.core_type = #tpu.core_type<tc>, window_params = [{pipeline_mode = #tpu.pipeline_mode<synchronous>, transform_indices = @transform_0, window_bounds = array<i64: 4, 8, 16>}, {pipeline_mode = #tpu.pipeline_mode<synchronous>, transform_indices = @transform_1, window_bounds = array<i64: 4, 16, 16>}, {pipeline_mode = #tpu.pipeline_mode<synchronous>, transform_indices = @transform_2, window_bounds = array<i64: 4, 16, 64>}, {pipeline_mode = #tpu.pipeline_mode<synchronous>, transform_indices = @transform_3, window_bounds = array<i64: 4, 8, 16>}, {pipeline_mode = #tpu.pipeline_mode<synchronous>, transform_indices = @transform_4, window_bounds = array<i64: 4, 8, 64>}]} {
    %c0 = arith.constant 0 : index
    %c0_0 = arith.constant 0 : index
    %c0_1 = arith.constant 0 : index
    %0 = vector.load %arg1[%c0, %c0_0, %c0_1] : memref<4x8x16xf32, #tpu.memory_space<vmem>>, vector<4x8x16xf32>
    %c0_2 = arith.constant 0 : index
    %c0_3 = arith.constant 0 : index
    %c0_4 = arith.constant 0 : index
    %1 = vector.load %arg2[%c0_2, %c0_3, %c0_4] : memref<4x16x16xf32, #tpu.memory_space<vmem>>, vector<4x16x16xf32>
    %c0_5 = arith.constant 0 : index
    %c0_6 = arith.constant 0 : index
    %c0_7 = arith.constant 0 : index
    %2 = vector.load %arg3[%c0_5, %c0_6, %c0_7] : memref<4x16x64xf32, #tpu.memory_space<vmem>>, vector<4x16x64xf32>
    %c0_8 = arith.constant 0 : index
    %c0_9 = arith.constant 0 : index
    %c0_10 = arith.constant 0 : index
    %3 = vector.load %arg4[%c0_8, %c0_9, %c0_10] : memref<4x8x16xi32, #tpu.memory_space<vmem>>, vector<4x8x16xi32>
    "tpu.trace_start"() <{level = 10 : i32, message = "bmd,bnd->bmn"}> : () -> ()
    %cst = arith.constant dense<0.000000e+00> : vector<4x8x16xf32>
    %4 = tpu.matmul %0, %1, %cst {dimension_numbers = #tpu.dot_dimension_numbers<[2], [2], [1], [1], [0, 0, 0, 1, 1, 1], [0], [0]>} : vector<4x8x16xf32>, vector<4x16x16xf32>, vector<4x8x16xf32> -> vector<4x8x16xf32>
    "tpu.trace_stop"() : () -> ()
    %cst_11 = arith.constant 2.500000e-01 : f32
    %5 = vector.broadcast %cst_11 : f32 to vector<4x8x16xf32>
    %6 = arith.mulf %4, %5 : vector<4x8x16xf32>
    %cst_12 = arith.constant dense<0xFF800000> : vector<4x8xf32>
    %7 = vector.multi_reduction <maximumf>, %6, %cst_12 [2] : vector<4x8x16xf32> to vector<4x8xf32>
    %8 = vector.shape_cast %7 : vector<4x8xf32> to vector<4x8x1xf32>
    %9 = vector.broadcast %8 : vector<4x8x1xf32> to vector<4x8x16xf32>
    %10 = arith.subf %6, %9 : vector<4x8x16xf32>
    %11 = math.exp %10 : vector<4x8x16xf32>
    %cst_13 = arith.constant dense<0.000000e+00> : vector<4x8xf32>
    %12 = vector.multi_reduction <add>, %11, %cst_13 [2] : vector<4x8x16xf32> to vector<4x8xf32>
    %13 = vector.shape_cast %12 : vector<4x8xf32> to vector<4x8x1xf32>
    %cst_14 = arith.constant 2.000000e+00 : f32
    %14 = vector.broadcast %cst_14 : f32 to vector<4x8x1xf32>
    %15 = arith.divf %14, %13 : vector<4x8x1xf32>
    %c8388608_i32 = arith.constant 8388608 : i32
    %16 = vector.broadcast %c8388608_i32 : i32 to vector<4x8x16xi32>
    %17 = arith.cmpi sge, %3, %16 : vector<4x8x16xi32>
    %cst_15 = arith.constant 0.000000e+00 : f32
    %18 = vector.broadcast %cst_15 : f32 to vector<4x8x16xf32>
    %19 = arith.select %17, %11, %18 : vector<4x8x16xi1>, vector<4x8x16xf32>
    %20 = vector.broadcast %15 : vector<4x8x1xf32> to vector<4x8x16xf32>
    %21 = arith.mulf %19, %20 : vector<4x8x16xf32>
    "tpu.trace_start"() <{level = 10 : i32, message = "bmn,bnv->bmv"}> : () -> ()
    %cst_16 = arith.constant dense<0.000000e+00> : vector<4x8x64xf32>
    %22 = tpu.matmul %21, %2, %cst_16 {dimension_numbers = #tpu.dot_dimension_numbers<[2], [1], [1], [2], [0, 0, 0, 1, 1, 2], [0], [0]>} : vector<4x8x16xf32>, vector<4x16x64xf32>, vector<4x8x64xf32> -> vector<4x8x64xf32>
    "tpu.trace_stop"() : () -> ()
    %c0_17 = arith.constant 0 : index
    %c0_18 = arith.constant 0 : index
    %c0_19 = arith.constant 0 : index
    %23 = vector.load %arg5[%c0_17, %c0_18, %c0_19] : memref<4x8x64xf32, #tpu.memory_space<vmem>>, vector<4x8x64xf32>
    tpu.vector_store %arg5[%c0_17, %c0_18, %c0_19], %22 {strides = array<i32>} : memref<4x8x64xf32, #tpu.memory_space<vmem>>, vector<4x8x64xf32>,
    return
  }
  func.func @transform_0(%arg0: i32) -> (i32, i32, i32) {
    %c0_i32 = arith.constant 0 : i32
    %c0_i32_0 = arith.constant 0 : i32
    %c0_i32_1 = arith.constant 0 : i32
    %c0_i32_2 = arith.constant 0 : i32
    return %c0_i32, %c0_i32_0, %c0_i32_1 : i32, i32, i32
  }
  func.func @transform_1(%arg0: i32) -> (i32, i32, i32) {
    %c0_i32 = arith.constant 0 : i32
    %c0_i32_0 = arith.constant 0 : i32
    %c0_i32_1 = arith.constant 0 : i32
    %c0_i32_2 = arith.constant 0 : i32
    return %c0_i32, %c0_i32_0, %c0_i32_1 : i32, i32, i32
  }
  func.func @transform_2(%arg0: i32) -> (i32, i32, i32) {
    %c0_i32 = arith.constant 0 : i32
    %c0_i32_0 = arith.constant 0 : i32
    %c0_i32_1 = arith.constant 0 : i32
    %c0_i32_2 = arith.constant 0 : i32
    return %c0_i32, %c0_i32_0, %c0_i32_1 : i32, i32, i32
  }
  func.func @transform_3(%arg0: i32) -> (i32, i32, i32) {
    %c0_i32 = arith.constant 0 : i32
    %c0_i32_0 = arith.constant 0 : i32
    %c0_i32_1 = arith.constant 0 : i32
    %c0_i32_2 = arith.constant 0 : i32
    return %c0_i32, %c0_i32_0, %c0_i32_1 : i32, i32, i32
  }
  func.func @transform_4(%arg0: i32) -> (i32, i32, i32) {
    %c0_i32 = arith.constant 0 : i32
    %c0_i32_0 = arith.constant 0 : i32
    %c0_i32_1 = arith.constant 0 : i32
    %c0_i32_2 = arith.constant 0 : i32
    return %c0_i32, %c0_i32_0, %c0_i32_1 : i32, i32, i32
  }
}

</mosaic_0001>

<bundles_post_ra>
// kernel: tpu_custom_call.1
= control target key start
LH: loop header
LB: loop body
LE: loop exit
PB: predicated region body
PF: predicated region fallthrough
CT: control target
= control target key end

     0   :  { %9 = vsyncpa [#allocation3], 0  ;;  %s730_s0 = inlined_call_operand.hbm [shape: f32[4,8,16], index: 0, kind: input, shape index: {}]   ;;  %s731_s1 = inlined_call_operand.hbm [shape: f32[4,16,16], index: 1, kind: input, shape index: {}]   ;;  %s732_s2 = inlined_call_operand.hbm [shape: f32[4,16,64], index: 2, kind: input, shape index: {}]   ;;  %s733_s3 = inlined_call_operand.hbm [shape: s32[4,8,16], index: 3, kind: input, shape index: {}]   ;;  %s734_s4 = inlined_call_operand.hbm [shape: f32[4,8,64], index: 4, kind: output, shape index: {}]  }
   0x1   :  { %10 = vsyncpa [#allocation6], 0 }
   0x2   :  { %11 = vsyncpa [#allocation9], 0 }
   0x3   :  { %12 = vsyncpa [#allocation4], 0  ;;  %s30_s17 = sshll.u32 %s731_s1, 4  ;;  %s619_s18 = smov [#allocation5]   ;;  %s31_s17 = int_to_ptr.hbm [resolvable:$true] %s30_s17 }
   0x4   :  { %s32_s19 = sshll.u32 %s619_s18, 4  ;;  %s17_s22 = sshll.u32 %s730_s0, 4  ;;  %s33_s19 = int_to_ptr.vmem [resolvable:$true] %s32_s19  ;;  %s18_s22 = int_to_ptr.hbm [resolvable:$true] %s17_s22 }
   0x5   :  { %s620_s23 = smov 128   ;;  %s621_s24 = smov 8  }
   0x6   :  { %38 = dma.hbm_to_vmem [thread:$0]  %s31_s17, 1024, %s33_s19, [#allocation6], %s620_s23, %s620_s23, %s621_s24  }
   0x7   :  { %s622_s25 = smov [#allocation2]   ;;  %s43_s1 = sshll.u32 %s732_s2, 4  ;;  %s44_s1 = int_to_ptr.hbm [resolvable:$true] %s43_s1 }
   0x8   :  { %s19_s26 = sshll.u32 %s622_s25, 4  ;;  %s56_s30 = sshll.u32 %s733_s3, 4  ;;  %s20_s26 = int_to_ptr.vmem [resolvable:$true] %s19_s26  ;;  %s57_s30 = int_to_ptr.hbm [resolvable:$true] %s56_s30 }
   0x9   :  { %25 = dma.hbm_to_vmem [thread:$0]  %s18_s22, 512, %s20_s26, [#allocation3], %s620_s23, %s620_s23, %s621_s24  }
   0xa   :  { %s623_s5 = smov [#allocation7]   ;;  %s624_s7 = smov [#allocation8]  }
   0xb   :  { %s45_s6 = sshll.u32 %s623_s5, 4  ;;  %s58_s2 = sshll.u32 %s624_s7, 4  ;;  %s46_s6 = int_to_ptr.vmem [resolvable:$true] %s45_s6  ;;  %s59_s2 = int_to_ptr.vmem [resolvable:$true] %s58_s2 }
   0xc   :  { %51 = dma.hbm_to_vmem [thread:$0]  %s44_s1, 1024, %s46_s6, [#allocation6], %s620_s23, %s620_s23, %s621_s24  }
   0xd   :  { %64 = dma.hbm_to_vmem [thread:$0]  %s57_s30, 512, %s59_s2, [#allocation9], %s620_s23, %s620_s23, %s621_s24  }
   0xe   :  { %611 = dma.done.wait [#allocation3], 512  }
   0xf   :  { %612 = vsyncadd [#allocation3], 4294966784 }
  0x10   :  { %613 = dma.done.wait [#allocation6], 2048  }
  0x11   :  { %614 = vsyncadd [#allocation6], 4294965248 }
  0x12   :  { %615 = dma.done.wait [#allocation9], 512  }
  0x13   :  { %616 = vsyncadd [#allocation9], 4294966784  ;;  %vm105_vm0 = vcmask 130048   ;;  %v86_v0 = vld [vmem:[#allocation5 + $0x8] sm:$0xff]  ;;  %v85_v2 = vld [vmem:[#allocation5] sm:$0xff]  ;;  %s625_s3 = smov [#allocation10]  }
  0x14   :  { %v90_v1 = vld [vmem:[#allocation5 + $0x28] sm:$0xff]  ;;  %452 = vmatpush.xpose.msk.msra.mxu0 %vm105_vm0, %v86_v0  ;;  %v89_v3 = vld [vmem:[#allocation5 + $0x20] sm:$0xff]  ;;  %v88_v4 = vld [vmem:[#allocation5 + $0x18] sm:$0xff]  ;;  %s435_s8 = sshll.u32 %s625_s3, 4  ;;  %s437_s11 = sshll.u32 %s734_s4, 4  ;;  %s436_s8 = int_to_ptr.vmem [resolvable:$true] %s435_s8  ;;  %s438_s11 = int_to_ptr.hbm [resolvable:$true] %s437_s11 }
  0x15   :  { %458 = vmatpush.xpose.msk.msra.mxu2 %vm105_vm0, %v90_v1  ;;  %v92_v5 = vld [vmem:[#allocation5 + $0x38] sm:$0xff]  ;;  %455 = vmatpush.xpose.msk.msra.mxu1 %vm105_vm0, %v88_v4  ;;  %v87_v6 = vld [vmem:[#allocation5 + $0x10] sm:$0xff]  ;;  %v81_v8 = vld [vmem:[#allocation2] sm:$0xff] }
  0x16   :  { %461 = vmatpush.xpose.msk.msra.mxu3 %vm105_vm0, %v92_v5  ;;  %v91_v7 = vld [vmem:[#allocation5 + $0x30] sm:$0xff]  ;;  %v82_v10 = vld [vmem:[#allocation2 + $0x8] sm:$0xff]  ;;  %v84_v11 = vld [vmem:[#allocation2 + $0x18] sm:$0xff] }
  0x17   :  { %v83_v9 = vld [vmem:[#allocation2 + $0x10] sm:$0xff]  ;;  %v94_v44 = vld [vmem:[#allocation7 + $0x8] sm:$0xff]  ;;  %v93_v45 = vld [vmem:[#allocation7] sm:$0xff] }
  0x18   :  { %453 = vmatpush.xpose.msk.msra.mxu0 %vm105_vm0, %v85_v2  ;;  %v98_v46 = vld [vmem:[#allocation7 + $0x28] sm:$0xff]  ;;  %v96_v47 = vld [vmem:[#allocation7 + $0x18] sm:$0xff]  ;;  %v97_v48 = vld [vmem:[#allocation7 + $0x20] sm:$0xff] }
  0x19   :  { %459 = vmatpush.xpose.msk.msra.mxu2 %vm105_vm0, %v89_v3  ;;  %456 = vmatpush.xpose.msk.msra.mxu1 %vm105_vm0, %v87_v6  ;;  %v95_v49 = vld [vmem:[#allocation7 + $0x10] sm:$0xff]  ;;  %v100_v51 = vld [vmem:[#allocation7 + $0x38] sm:$0xff]  ;;  %v101_v61 = vld [vmem:[#allocation8] sm:$0xff] }
  0x1a   :  { %462 = vmatpush.xpose.msk.msra.mxu3 %vm105_vm0, %v91_v7  ;;  %v99_v52 = vld [vmem:[#allocation7 + $0x30] sm:$0xff]  ;;  %vm322_vm4 = vcmp.ge.s32.totalorder %v101_v61, 8388608 }
  0x1b   :  { %454 = vmatmul.msk.f32.vlgmr.msra.gmra.mxu0 %vm105_vm0, %v81_v8 }
  0x1c   :  { %460 = vmatmul.msk.f32.vlgmr.msra.gmra.mxu2 %vm105_vm0, %v83_v9  ;;  %457 = vmatmul.msk.f32.vlgmr.msra.gmra.mxu1 %vm105_vm0, %v82_v10 }
  0x1d   :  { %463 = vmatmul.msk.f32.vlgmr.msra.gmra.mxu3 %vm105_vm0, %v84_v11  ;;  %351 = vmatpush.msrb.mxu0 %v94_v44 }
  0x1e   :  { %397 = vmatpush.msrb.mxu2 %v98_v46  ;;  %374 = vmatpush.msrb.mxu1 %v96_v47 }
  0x1f   :  { %352 = vmatpush.msrb.mxu0 %v93_v45  ;;  %420 = vmatpush.msrb.mxu3 %v100_v51 }
  0x20   :  { %398 = vmatpush.msrb.mxu2 %v97_v48  ;;  %375 = vmatpush.msrb.mxu1 %v95_v49 }
  0x21   :  { %421 = vmatpush.msrb.mxu3 %v99_v52 }
  0x98   :  { %v132_v12 = vpop.f32.mrf.mxu0 }
  0x99   :  { %v222_v13 = vmul.f32 0.25, %v132_v12  ;;  %v161_v14 = vpop.f32.mrf.mxu1 }
  0x9a   :  { %v223_v16 = vmul.f32 0.25, %v161_v14 }
  0x9b   :  { %v226_v15 = vsel %vm105_vm0, %v222_v13, -inf }
  0x9c   :  { %227 = vmax.xlane.f32.xlu1 %v226_v15  ;;  %v229_v21 = vsel %vm105_vm0, %v223_v16, -inf }
  0x9f   :  { %v190_v17 = vpop.f32.mrf.mxu2 }
  0xa0   :  { %v224_v18 = vmul.f32 0.25, %v190_v17  ;;  %v219_v19 = vpop.f32.mrf.mxu3 }
  0xa1   :  { %v225_v22 = vmul.f32 0.25, %v219_v19 }
  0xa2   :  { %v232_v20 = vsel %vm105_vm0, %v224_v18, -inf }
  0xa3   :  { %233 = vmax.xlane.f32.xlu0 %v232_v20  ;;  %v235_v23 = vsel %vm105_vm0, %v225_v22, -inf  ;;  %v102_v20 = vld [vmem:[#allocation8 + $0x8] sm:$0xff] }
  0xa4   :  { %230 = vmax.xlane.f32.xlu1 %v229_v21  ;;  %vm323_vm14 = vcmp.ge.s32.totalorder %v102_v20, 8388608 }
  0xab   :  { %236 = vmax.xlane.f32.xlu0 %v235_v23 }
 0x10f   :  { %v228_v24 = vpop.xlane.xlu1 %227 }
 0x110   :  { %v238_v25 = vsub.f32 %v222_v13, %v228_v24  ;;  %v103_v13 = vld [vmem:[#allocation8 + $0x10] sm:$0xff] }
 0x111   :  { %vm324_vm11 = vcmp.ge.s32.totalorder %v103_v13, 8388608 }
 0x112   :  { %v242_v26 = vmul.f32 1.442695, %v238_v25 }
 0x114   :  { %475 = vpow2.f32 %v242_v26 }
 0x116   :  { %v234_v27 = vpop.xlane.xlu0 %233 }
 0x117   :  { %v240_v28 = vsub.f32 %v224_v18, %v234_v27  ;;  %v231_v29 = vpop.xlane.xlu1 %230 }
 0x118   :  { %v239_v31 = vsub.f32 %v223_v16, %v231_v29 }
 0x119   :  { %v246_v30 = vmul.f32 1.442695, %v240_v28 }
 0x11a   :  { %v691_v32 = vpop.eup %475  ;;  %v244_v33 = vmul.f32 1.442695, %v239_v31 }
 0x11b   :  { %477 = vpow2.f32 %v246_v30  ;;  %v250_v34 = vsel %vm105_vm0, %v691_v32, 0.0  ;;  %v326_v16 = vsel %vm322_vm4, %v691_v32, 0.0 }
 0x11c   :  { %479 = vpow2.f32 %v244_v33  ;;  %251 = vadd.xlane.f32.xlu0 %v250_v34 }
 0x11e   :  { %v237_v35 = vpop.xlane.xlu0 %236 }
 0x11f   :  { %v241_v36 = vsub.f32 %v225_v22, %v237_v35 }
 0x121   :  { %v695_v37 = vpop.eup %477  ;;  %v248_v38 = vmul.f32 1.442695, %v241_v36 }
 0x122   :  { %v256_v39 = vsel %vm105_vm0, %v695_v37, 0.0  ;;  %v699_v40 = vpop.eup %479  ;;  %v328_v34 = vsel %vm324_vm11, %v695_v37, 0.0 }
 0x123   :  { %481 = vpow2.f32 %v248_v38  ;;  %257 = vadd.xlane.f32.xlu2 %v256_v39  ;;  %v253_v41 = vsel %vm105_vm0, %v699_v40, 0.0  ;;  %v327_v39 = vsel %vm323_vm14, %v699_v40, 0.0 }
 0x124   :  { %254 = vadd.xlane.f32.xlu1 %v253_v41  ;;  %v104_v41 = vld [vmem:[#allocation8 + $0x18] sm:$0xff] }
 0x129   :  { %v703_v42 = vpop.eup %481 }
 0x12a   :  { %v259_v43 = vsel %vm105_vm0, %v703_v42, 0.0 }
 0x12b   :  { %260 = vadd.xlane.f32.xlu2 %v259_v43 }
 0x18f   :  { %v252_v50 = vpop.xlane.xlu0 %251 }
 0x190   :  { %483 = vrcp.f32 %v252_v50  ;;  %v273_v58 = vand.u32 2147483648, %v252_v50  ;;  %v271_v60 = vand.u32 2147483647, %v252_v50  ;;  %vm267_vm2 = vweird.f32 %v252_v50 }
 0x192   :  { %v274_v3 = vor.u32 1.1754944e-38, %v273_v58  ;;  %vm272_vm5 = vcmp.eq.f32.partialorder %v271_v60, 8.507059e+37 }
 0x196   :  { %v258_v53 = vpop.xlane.xlu2 %257  ;;  %v484_v54 = vpop.eup %483 }
 0x197   :  { %485 = vrcp.f32 %v258_v53  ;;  %v263_v55 = vmul.f32 %v484_v54, %v252_v50  ;;  %v255_v56 = vpop.xlane.xlu1 %254  ;;  %vm268_vm1 = vweird.f32 %v484_v54  ;;  %v301_v8 = vand.u32 2147483647, %v258_v53 }
 0x198   :  { %487 = vrcp.f32 %v255_v56  ;;  %vm269_vm3 = vmor %vm267_vm2, %vm268_vm1  ;;  %v303_v9 = vand.u32 2147483648, %v258_v53  ;;  %vm297_vm7 = vweird.f32 %v258_v53  ;;  %v286_v14 = vand.u32 2147483647, %v255_v56 }
 0x199   :  { %v264_v57 = vsub.f32 1.0, %v263_v55  ;;  %v288_v15 = vand.u32 2147483648, %v255_v56  ;;  %vm302_vm10 = vcmp.eq.f32.partialorder %v301_v8, 8.507059e+37  ;;  %vm282_vm12 = vweird.f32 %v255_v56 }
 0x19a   :  { %v304_v22 = vor.u32 1.1754944e-38, %v303_v9  ;;  %vm287_vm15 = vcmp.eq.f32.partialorder %v286_v14, 8.507059e+37 }
 0x19b   :  { %v265_v59 = vmul.f32 %v484_v54, %v264_v57  ;;  %v289_v26 = vor.u32 1.1754944e-38, %v288_v15 }
 0x19d   :  { %v486_v62 = vpop.eup %485  ;;  %v266_v63 = vadd.f32 %v484_v54, %v265_v59 }
 0x19e   :  { %v293_v0 = vmul.f32 %v486_v62, %v258_v53  ;;  %v707_v1 = vpop.xlane.xlu2 %260  ;;  %v488_v2 = vpop.eup %487  ;;  %vm298_vm6 = vweird.f32 %v486_v62 }
 0x19f   :  { %489 = vrcp.f32 %v707_v1  ;;  %v270_v4 = vsel %vm269_vm3, %v484_v54, %v266_v63  ;;  %v278_v6 = vmul.f32 %v488_v2, %v255_v56  ;;  %vm283_vm8 = vweird.f32 %v488_v2  ;;  %vm299_vm9 = vmor %vm297_vm7, %vm298_vm6 }
 0x1a0   :  { %v294_v5 = vsub.f32 1.0, %v293_v0  ;;  %v275_v7 = vsel %vm272_vm5, %v274_v3, %v270_v4  ;;  %vm284_vm13 = vmor %vm282_vm12, %vm283_vm8  ;;  %v316_v32 = vand.u32 2147483647, %v707_v1  ;;  %v318_v33 = vand.u32 2147483648, %v707_v1 }
 0x1a1   :  { %v276_v10 = vmul.f32 2.0, %v275_v7  ;;  %v279_v12 = vsub.f32 1.0, %v278_v6  ;;  %vm312_vm2 = vweird.f32 %v707_v1  ;;  %vm325_vm5 = vcmp.ge.s32.totalorder %v104_v41, 8388608 }
 0x1a2   :  { %v295_v11 = vmul.f32 %v486_v62, %v294_v5  ;;  %v319_v45 = vor.u32 1.1754944e-38, %v318_v33  ;;  %vm317_vm4 = vcmp.eq.f32.partialorder %v316_v32, 8.507059e+37  ;;  %v329_v48 = vsel %vm325_vm5, %v703_v42, 0.0 }
 0x1a3   :  { %v280_v18 = vmul.f32 %v488_v2, %v279_v12  ;;  %v330_v19 = vmul.f32 %v326_v16, %v276_v10  ;;  %vm426_vm6 = vcmask 523264  }
 0x1a4   :  { %v296_v17 = vadd.f32 %v486_v62, %v295_v11 }
 0x1a5   :  { %v490_v21 = vpop.eup %489  ;;  %v281_v24 = vadd.f32 %v488_v2, %v280_v18  ;;  %464 = vmatmul.msk.f32.vlgmr.msrb.gmra.mxu0 %vm105_vm0, %v330_v19 }
 0x1a6   :  { %v300_v23 = vsel %vm299_vm9, %v486_v62, %v296_v17  ;;  %v308_v25 = vmul.f32 %v490_v21, %v707_v1  ;;  %vm313_vm1 = vweird.f32 %v490_v21 }
 0x1a7   :  { %v305_v27 = vsel %vm302_vm10, %v304_v22, %v300_v23  ;;  %v285_v28 = vsel %vm284_vm13, %v488_v2, %v281_v24  ;;  %vm314_vm3 = vmor %vm312_vm2, %vm313_vm1 }
 0x1a8   :  { %v309_v29 = vsub.f32 1.0, %v308_v25  ;;  %v306_v30 = vmul.f32 2.0, %v305_v27  ;;  %v290_v31 = vsel %vm287_vm15, %v289_v26, %v285_v28 }
 0x1a9   :  { %v291_v35 = vmul.f32 2.0, %v290_v31 }
 0x1aa   :  { %v310_v36 = vmul.f32 %v490_v21, %v309_v29  ;;  %v332_v38 = vmul.f32 %v328_v34, %v306_v30 }
 0x1ab   :  { %v331_v44 = vmul.f32 %v327_v39, %v291_v35 }
 0x1ac   :  { %v311_v43 = vadd.f32 %v490_v21, %v310_v36  ;;  %466 = vmatmul.msk.f32.vlgmr.msrb.gmra.mxu2 %vm105_vm0, %v332_v38 }
 0x1ad   :  { %465 = vmatmul.msk.f32.vlgmr.msrb.gmra.mxu1 %vm105_vm0, %v331_v44 }
 0x1ae   :  { %v315_v46 = vsel %vm314_vm3, %v490_v21, %v311_v43 }
 0x1af   :  { %v320_v37 = vsel %vm317_vm4, %v319_v45, %v315_v46 }
 0x1b0   :  { %v321_v47 = vmul.f32 2.0, %v320_v37 }
 0x1b2   :  { %v333_v49 = vmul.f32 %v329_v48, %v321_v47 }
 0x1b4   :  { %467 = vmatmul.msk.f32.vlgmr.msrb.gmra.mxu3 %vm105_vm0, %v333_v49 }
 0x222   :  { %v354_v40 = vpop.f32.mrf.mxu0 }
 0x223   :  { %427 = vst.msk [vmem:[#allocation10] sm:$0xff] %vm426_vm6, %v354_v40 }
 0x22a   :  { %v377_v50 = vpop.f32.mrf.mxu1 }
 0x22b   :  { %428 = vst.msk [vmem:[#allocation10 + $0x8] sm:$0xff] %vm426_vm6, %v377_v50 }
 0x22f   :  { %v400_v51 = vpop.f32.mrf.mxu2 }
 0x230   :  { %429 = vst.msk [vmem:[#allocation10 + $0x10] sm:$0xff] %vm426_vm6, %v400_v51 }
 0x237   :  { %v423_v52 = vpop.f32.mrf.mxu3 }
 0x238   :  { %430 = vst.msk [vmem:[#allocation10 + $0x18] sm:$0xff] %vm426_vm6, %v423_v52 }
 0x239   :  { %443 = dma.vmem_to_hbm [thread:$0]  %s436_s8, 512, %s438_s11, [#allocation4], %s620_s23, %s620_s23, %s621_s24  }
 0x23a   :  { %617 = dma.done.wait [#allocation4], 512  }
 0x23b   :  { %618 = vsyncadd [#allocation4], 4294966784 }
 0x23c   :  { %448 = vsyncpa [#allocation3], 1 }
 0x23d   :  { %449 = vsyncpa [#allocation6], 1 }
 0x23e   :  { %450 = vsyncpa [#allocation9], 1 }
 0x23f   :  { %451 = vsyncpa [#allocation4], 1 }

</bundles_post_ra>
